<compile_context>
chip_gen: v5e
topology: v5e:2x2
jax: 0.10.0
libtpu: 0.0.40
codegen_flags: <defaults>
</compile_context>

<pallas_src>
import functools

import jax
import jax.numpy as jnp
from jax.experimental import pallas as pl
from jax.experimental.pallas import tpu as pltpu


def lstm_kernel(x_ref, wih_ref, whh_ref, b_ref, wfc_ref, bfc_ref,
                out_ref, xp_scr, h_scr, c_scr, *,
                seq_len, time_chunk, batch_pad, hidden_size, unroll):
    """One grid step = one chunk of `time_chunk` timesteps.

    x_ref   : (Tc*Bp, I)   this chunk, time-major, batch padded to sublane tile
    wih_ref : (I, 4H)      W_ih^T   (g-gate columns pre-scaled by 2)
    whh_ref : (H, 4H)      W_hh^T   (g-gate columns pre-scaled by 2)
    b_ref   : (1, 4H)      b_ih + b_hh (g slice pre-scaled by 2)
    wfc_ref : (H, 128)     W_fc^T zero-padded to 128 lanes
    bfc_ref : (1, 128)     b_fc zero-padded to 128 lanes
    out_ref : (Bp, 128)    lane-dense output slab (col 0 holds the result)
    xp_scr  : (Tc*Bp, 4H)  per-chunk hoisted input projection
    h_scr   : (Bp, H)      persistent hidden state across grid steps
    c_scr   : (Bp, H)      persistent cell state across grid steps
    """
    T, Tc, Bp, H = seq_len, time_chunk, batch_pad, hidden_size
    chunk = pl.program_id(0)
    n_chunks = pl.num_programs(0)
    needs_tail_mask = (n_chunks_static := -(-T // Tc)) * Tc != T  # static

    @pl.when(chunk == 0)
    def _():
        h_scr[...] = jnp.zeros_like(h_scr)
        c_scr[...] = jnp.zeros_like(c_scr)

    # Phase 1: hoisted input projection for the whole chunk (bias folded in).
    xp_scr[...] = (jnp.dot(x_ref[...], wih_ref[...],
                           preferred_element_type=jnp.float32)
                   + b_ref[...])

    whh = whh_ref[...]          # loaded once per chunk, resident across the loop
    t0 = chunk * Tc             # global timestep offset of this chunk

    # Phase 2: serial recurrence over the chunk.
    def step(t, carry):
        h, c = carry
        row = pl.multiple_of(t * Bp, Bp)
        gates = (xp_scr[pl.ds(row, Bp), :]
                 + jnp.dot(h, whh, preferred_element_type=jnp.float32))
        # PyTorch gate order [i, f, g, o]; one full-vreg sigmoid EUP pass.
        # g columns carry 2x pre-scale, so tanh(x_g) == 2*sigmoid(2*x_g) - 1.
        sig = jax.nn.sigmoid(gates)
        i_g = sig[:, 0 * H:1 * H]
        f_g = sig[:, 1 * H:2 * H]
        g_g = 2.0 * sig[:, 2 * H:3 * H] - 1.0
        o_g = sig[:, 3 * H:4 * H]
        c_new = f_g * c + i_g * g_g
        h_new = o_g * jnp.tanh(c_new)
        if needs_tail_mask:  # only traced when T % Tc != 0
            valid = (t0 + t) < T
            h_new = jnp.where(valid, h_new, h)
            c_new = jnp.where(valid, c_new, c)
        return (h_new, c_new)

    h, c = jax.lax.fori_loop(0, Tc, step, (h_scr[...], c_scr[...]),
                             unroll=unroll)
    h_scr[...] = h
    c_scr[...] = c

    # Final FC on the last hidden state; 128-lane-padded -> unmasked stores.
    @pl.when(chunk == n_chunks - 1)
    def _():
        out_ref[...] = (jnp.dot(h, wfc_ref[...],
                                preferred_element_type=jnp.float32)
                        + bfc_ref[...])


def lstm_forward(x, w_ih, w_hh, b_ih, b_hh, w_fc, b_fc, *,
                 time_chunk=32, unroll=4):
    """x: (B, T, I) float32, batch_first like PyTorch. Returns (B, 1)."""
    B, T, I = x.shape
    H = w_hh.shape[1]                          # w_hh is (4H, H)
    Bp = ((B + 7) // 8) * 8                    # pad batch to f32 sublane tile
    OUT_LANES = 128                            # lane-dense output slab
    Tc = min(time_chunk, T)
    n_chunks = -(-T // Tc)
    Tpad = n_chunks * Tc

    # Time-major + pad batch/time + flatten to (Tpad*Bp, I): one small fused
    # XLA copy of x; buys one big input-projection matmul per chunk in-kernel.
    x_tm = jnp.transpose(x, (1, 0, 2))                          # (T, B, I)
    x_tm = jnp.pad(x_tm, ((0, Tpad - T), (0, Bp - B), (0, 0)))  # (Tpad, Bp, I)
    x2d = x_tm.reshape(Tpad * Bp, I)

    # Pre-scale the g-gate columns by 2 so tanh folds into the sigmoid pass.
    g_scale = jnp.ones((1, 4 * H), jnp.float32).at[:, 2 * H:3 * H].set(2.0)
    wih = jnp.transpose(w_ih) * g_scale                         # (I, 4H)
    whh = jnp.transpose(w_hh) * g_scale                         # (H, 4H)
    b = (b_ih + b_hh).reshape(1, 4 * H) * g_scale               # (1, 4H)
    wfc = jnp.zeros((H, OUT_LANES), jnp.float32).at[:, 0:1].set(
        jnp.transpose(w_fc))                                    # (H, 128)
    bfc = jnp.zeros((1, OUT_LANES), jnp.float32).at[0, 0].set(b_fc[0])

    out = pl.pallas_call(
        functools.partial(lstm_kernel, seq_len=T, time_chunk=Tc,
                          batch_pad=Bp, hidden_size=H, unroll=unroll),
        out_shape=jax.ShapeDtypeStruct((Bp, OUT_LANES), jnp.float32),
        grid_spec=pltpu.PrefetchScalarGridSpec(
            num_scalar_prefetch=0,
            grid=(n_chunks,),
            in_specs=[
                pl.BlockSpec((Tc * Bp, I), lambda t: (t, 0)),       # x chunk
                pl.BlockSpec((I, 4 * H), lambda t: (0, 0)),         # W_ih^T
                pl.BlockSpec((H, 4 * H), lambda t: (0, 0)),         # W_hh^T
                pl.BlockSpec((1, 4 * H), lambda t: (0, 0)),         # bias
                pl.BlockSpec((H, OUT_LANES), lambda t: (0, 0)),     # W_fc^T
                pl.BlockSpec((1, OUT_LANES), lambda t: (0, 0)),     # b_fc
            ],
            out_specs=pl.BlockSpec((Bp, OUT_LANES), lambda t: (0, 0)),
            scratch_shapes=[
                pltpu.VMEM((Tc * Bp, 4 * H), jnp.float32),  # chunk projection
                pltpu.VMEM((Bp, H), jnp.float32),           # persistent h
                pltpu.VMEM((Bp, H), jnp.float32),           # persistent c
            ],
        ),
        compiler_params=pltpu.CompilerParams(
            dimension_semantics=("arbitrary",),   # serial recurrence over time
            vmem_limit_bytes=32 * 1024 * 1024,    # safe on v5e/v6e/v7x
        ),
    )(x2d, wih, whh, b, wfc, bfc)
    return out[:B, :1]


def lstm_reference(x, w_ih, w_hh, b_ih, b_hh, w_fc, b_fc):
    """Pure-JAX reference matching PyTorch nn.LSTM semantics."""
    B, T, I = x.shape
    H = w_hh.shape[1]
    b = b_ih + b_hh

    def step(carry, x_t):
        h, c = carry
        gates = x_t @ w_ih.T + h @ w_hh.T + b
        i_g = jax.nn.sigmoid(gates[:, 0 * H:1 * H])
        f_g = jax.nn.sigmoid(gates[:, 1 * H:2 * H])
        g_g = jnp.tanh(gates[:, 2 * H:3 * H])
        o_g = jax.nn.sigmoid(gates[:, 3 * H:4 * H])
        c = f_g * c + i_g * g_g
        h = o_g * jnp.tanh(c)
        return (h, c), None

    h0 = jnp.zeros((B, H), jnp.float32)
    c0 = jnp.zeros((B, H), jnp.float32)
    (h_last, _), _ = jax.lax.scan(step, (h0, c0),
                                  jnp.transpose(x, (1, 0, 2)))
    return h_last @ w_fc.T + b_fc


if __name__ == "__main__":
    B, T, I, H = 4, 8, 16, 32

    key = jax.random.PRNGKey(0)
    ks = jax.random.split(key, 8)
    scale = 1.0 / jnp.sqrt(jnp.float32(H))   # PyTorch uniform(-1/sqrt(H), 1/sqrt(H))

    x = jax.random.normal(ks[0], (B, T, I), jnp.float32)
    w_ih = jax.random.uniform(ks[1], (4 * H, I), jnp.float32, -scale, scale)
    w_hh = jax.random.uniform(ks[2], (4 * H, H), jnp.float32, -scale, scale)
    b_ih = jax.random.uniform(ks[3], (4 * H,), jnp.float32, -scale, scale)
    b_hh = jax.random.uniform(ks[4], (4 * H,), jnp.float32, -scale, scale)
    w_fc = jax.random.uniform(ks[5], (1, H), jnp.float32, -scale, scale)
    b_fc = jax.random.uniform(ks[6], (1,), jnp.float32, -scale, scale)

    # time_chunk=4 -> 2 grid steps at T=8, exercising the persistent-state path.
    out = lstm_forward(x, w_ih, w_hh, b_ih, b_hh, w_fc, b_fc, time_chunk=4)
    out = jax.block_until_ready(out)

    ref = lstm_reference(x, w_ih, w_hh, b_ih, b_hh, w_fc, b_fc)
    assert out.shape == (B, 1)
    assert jnp.allclose(out, ref, atol=1e-5, rtol=1e-5), (out, ref)

    print("KERNEL_OK")
</pallas_src>

<mosaic_0001>
module attributes {stable_mosaic.version = 11 : i64} {
  func.func @lstm_kernel(%arg0: i32, %arg1: memref<32x16xf32, #tpu.memory_space<vmem>>, %arg2: memref<16x128xf32, #tpu.memory_space<vmem>>, %arg3: memref<32x128xf32, #tpu.memory_space<vmem>>, %arg4: memref<1x128xf32, #tpu.memory_space<vmem>>, %arg5: memref<32x128xf32, #tpu.memory_space<vmem>>, %arg6: memref<1x128xf32, #tpu.memory_space<vmem>>, %arg7: memref<8x128xf32, #tpu.memory_space<vmem>>, %arg8: memref<32x128xf32, #tpu.memory_space<vmem>>, %arg9: memref<8x32xf32, #tpu.memory_space<vmem>>, %arg10: memref<8x32xf32, #tpu.memory_space<vmem>>) attributes {dimension_semantics = [#tpu.dimension_semantics<arbitrary>], iteration_bounds = array<i64: 2>, scalar_prefetch = 0 : i64, scratch_operands = 3 : i64, tpu.core_type = #tpu.core_type<tc>, window_params = [{transform_indices = @transform_0, window_bounds = array<i64: 32, 16>}, {pipeline_mode = #tpu.pipeline_mode<synchronous>, transform_indices = @transform_1, window_bounds = array<i64: 16, 128>}, {pipeline_mode = #tpu.pipeline_mode<synchronous>, transform_indices = @transform_2, window_bounds = array<i64: 32, 128>}, {pipeline_mode = #tpu.pipeline_mode<synchronous>, transform_indices = @transform_3, window_bounds = array<i64: 1, 128>}, {pipeline_mode = #tpu.pipeline_mode<synchronous>, transform_indices = @transform_4, window_bounds = array<i64: 32, 128>}, {pipeline_mode = #tpu.pipeline_mode<synchronous>, transform_indices = @transform_5, window_bounds = array<i64: 1, 128>}, {pipeline_mode = #tpu.pipeline_mode<synchronous>, transform_indices = @transform_6, window_bounds = array<i64: 8, 128>}]} {
    %c0_i32 = arith.constant 0 : i32
    %0 = arith.cmpi eq, %arg0, %c0_i32 : i32
    %1 = arith.extui %0 : i1 to i32
    %c0_i32_0 = arith.constant 0 : i32
    %2 = arith.cmpi ne, %1, %c0_i32_0 : i32
    scf.if %2 {
      %cst_44 = arith.constant 0.000000e+00 : f32
      %114 = vector.broadcast %cst_44 : f32 to vector<8x32xf32>
      %c0_45 = arith.constant 0 : index
      %c0_46 = arith.constant 0 : index
      %115 = vector.load %arg9[%c0_45, %c0_46] : memref<8x32xf32, #tpu.memory_space<vmem>>, vector<8x32xf32>
      tpu.vector_store %arg9[%c0_45, %c0_46], %114 {strides = array<i32>} : memref<8x32xf32, #tpu.memory_space<vmem>>, vector<8x32xf32>,
      %cst_47 = arith.constant 0.000000e+00 : f32
      %116 = vector.broadcast %cst_47 : f32 to vector<8x32xf32>
      %c0_48 = arith.constant 0 : index
      %c0_49 = arith.constant 0 : index
      %117 = vector.load %arg10[%c0_48, %c0_49] : memref<8x32xf32, #tpu.memory_space<vmem>>, vector<8x32xf32>
      tpu.vector_store %arg10[%c0_48, %c0_49], %116 {strides = array<i32>} : memref<8x32xf32, #tpu.memory_space<vmem>>, vector<8x32xf32>,
    } else {
    }
    %c0 = arith.constant 0 : index
    %c0_1 = arith.constant 0 : index
    %3 = vector.load %arg1[%c0, %c0_1] : memref<32x16xf32, #tpu.memory_space<vmem>>, vector<32x16xf32>
    %c0_2 = arith.constant 0 : index
    %c0_3 = arith.constant 0 : index
    %4 = vector.load %arg2[%c0_2, %c0_3] : memref<16x128xf32, #tpu.memory_space<vmem>>, vector<16x128xf32>
    %cst = arith.constant dense<0.000000e+00> : vector<32x128xf32>
    %5 = tpu.matmul %3, %4, %cst {dimension_numbers = #tpu.dot_dimension_numbers<[1], [0], [0], [1], [0, 0, 1, 1], [], []>} : vector<32x16xf32>, vector<16x128xf32>, vector<32x128xf32> -> vector<32x128xf32>
    %c0_4 = arith.constant 0 : index
    %c0_5 = arith.constant 0 : index
    %6 = vector.load %arg4[%c0_4, %c0_5] : memref<1x128xf32, #tpu.memory_space<vmem>>, vector<1x128xf32>
    %7 = vector.broadcast %6 : vector<1x128xf32> to vector<32x128xf32>
    %8 = arith.addf %5, %7 : vector<32x128xf32>
    %c0_6 = arith.constant 0 : index
    %c0_7 = arith.constant 0 : index
    %9 = vector.load %arg8[%c0_6, %c0_7] : memref<32x128xf32, #tpu.memory_space<vmem>>, vector<32x128xf32>
    tpu.vector_store %arg8[%c0_6, %c0_7], %8 {strides = array<i32>} : memref<32x128xf32, #tpu.memory_space<vmem>>, vector<32x128xf32>,
    %c0_8 = arith.constant 0 : index
    %c0_9 = arith.constant 0 : index
    %10 = vector.load %arg3[%c0_8, %c0_9] : memref<32x128xf32, #tpu.memory_space<vmem>>, vector<32x128xf32>
    %c0_10 = arith.constant 0 : index
    %c0_11 = arith.constant 0 : index
    %11 = vector.load %arg9[%c0_10, %c0_11] : memref<8x32xf32, #tpu.memory_space<vmem>>, vector<8x32xf32>
    %c0_12 = arith.constant 0 : index
    %c0_13 = arith.constant 0 : index
    %12 = vector.load %arg10[%c0_12, %c0_13] : memref<8x32xf32, #tpu.memory_space<vmem>>, vector<8x32xf32>
    %c0_i32_14 = arith.constant 0 : i32
    %c8_i32 = arith.constant 8 : i32
    %13 = arith.muli %c0_i32_14, %c8_i32 : i32
    %14 = tpu.assume_multiple %13, 8 : i32
    %15 = arith.index_cast %14 : i32 to index
    %c0_15 = arith.constant 0 : index
    %16 = vector.load %arg8[%15, %c0_15] : memref<32x128xf32, #tpu.memory_space<vmem>>, vector<8x128xf32>
    %cst_16 = arith.constant dense<0.000000e+00> : vector<8x128xf32>
    %17 = tpu.matmul %11, %10, %cst_16 {dimension_numbers = #tpu.dot_dimension_numbers<[1], [0], [0], [1], [0, 0, 1, 1], [], []>} : vector<8x32xf32>, vector<32x128xf32>, vector<8x128xf32> -> vector<8x128xf32>
    %18 = arith.addf %16, %17 : vector<8x128xf32>
    %19 = arith.negf %18 : vector<8x128xf32>
    %20 = math.exp %19 : vector<8x128xf32>
    %cst_17 = arith.constant 1.000000e+00 : f32
    %21 = vector.broadcast %cst_17 : f32 to vector<8x128xf32>
    %22 = arith.addf %21, %20 : vector<8x128xf32>
    %23 = arith.divf %21, %22 : vector<8x128xf32>
    %24 = vector.extract_strided_slice %23 {offsets = [0, 0], sizes = [8, 32], strides = [1, 1]} : vector<8x128xf32> to vector<8x32xf32>
    %25 = vector.extract_strided_slice %23 {offsets = [0, 32], sizes = [8, 32], strides = [1, 1]} : vector<8x128xf32> to vector<8x32xf32>
    %26 = vector.extract_strided_slice %23 {offsets = [0, 64], sizes = [8, 32], strides = [1, 1]} : vector<8x128xf32> to vector<8x32xf32>
    %cst_18 = arith.constant 2.000000e+00 : f32
    %27 = vector.broadcast %cst_18 : f32 to vector<8x32xf32>
    %28 = arith.mulf %27, %26 : vector<8x32xf32>
    %cst_19 = arith.constant 1.000000e+00 : f32
    %29 = vector.broadcast %cst_19 : f32 to vector<8x32xf32>
    %30 = arith.subf %28, %29 : vector<8x32xf32>
    %31 = vector.extract_strided_slice %23 {offsets = [0, 96], sizes = [8, 32], strides = [1, 1]} : vector<8x128xf32> to vector<8x32xf32>
    %32 = arith.mulf %25, %12 : vector<8x32xf32>
    %33 = arith.mulf %24, %30 : vector<8x32xf32>
    %34 = arith.addf %32, %33 : vector<8x32xf32>
    %35 = math.tanh %34 : vector<8x32xf32>
    %36 = arith.mulf %31, %35 : vector<8x32xf32>
    %c1_i32 = arith.constant 1 : i32
    %c8_i32_20 = arith.constant 8 : i32
    %37 = arith.muli %c1_i32, %c8_i32_20 : i32
    %38 = tpu.assume_multiple %37, 8 : i32
    %39 = arith.index_cast %38 : i32 to index
    %c0_21 = arith.constant 0 : index
    %40 = vector.load %arg8[%39, %c0_21] : memref<32x128xf32, #tpu.memory_space<vmem>>, vector<8x128xf32>
    %cst_22 = arith.constant dense<0.000000e+00> : vector<8x128xf32>
    %41 = tpu.matmul %36, %10, %cst_22 {dimension_numbers = #tpu.dot_dimension_numbers<[1], [0], [0], [1], [0, 0, 1, 1], [], []>} : vector<8x32xf32>, vector<32x128xf32>, vector<8x128xf32> -> vector<8x128xf32>
    %42 = arith.addf %40, %41 : vector<8x128xf32>
    %43 = arith.negf %42 : vector<8x128xf32>
    %44 = math.exp %43 : vector<8x128xf32>
    %cst_23 = arith.constant 1.000000e+00 : f32
    %45 = vector.broadcast %cst_23 : f32 to vector<8x128xf32>
    %46 = arith.addf %45, %44 : vector<8x128xf32>
    %47 = arith.divf %45, %46 : vector<8x128xf32>
    %48 = vector.extract_strided_slice %47 {offsets = [0, 0], sizes = [8, 32], strides = [1, 1]} : vector<8x128xf32> to vector<8x32xf32>
    %49 = vector.extract_strided_slice %47 {offsets = [0, 32], sizes = [8, 32], strides = [1, 1]} : vector<8x128xf32> to vector<8x32xf32>
    %50 = vector.extract_strided_slice %47 {offsets = [0, 64], sizes = [8, 32], strides = [1, 1]} : vector<8x128xf32> to vector<8x32xf32>
    %cst_24 = arith.constant 2.000000e+00 : f32
    %51 = vector.broadcast %cst_24 : f32 to vector<8x32xf32>
    %52 = arith.mulf %51, %50 : vector<8x32xf32>
    %cst_25 = arith.constant 1.000000e+00 : f32
    %53 = vector.broadcast %cst_25 : f32 to vector<8x32xf32>
    %54 = arith.subf %52, %53 : vector<8x32xf32>
    %55 = vector.extract_strided_slice %47 {offsets = [0, 96], sizes = [8, 32], strides = [1, 1]} : vector<8x128xf32> to vector<8x32xf32>
    %56 = arith.mulf %49, %34 : vector<8x32xf32>
    %57 = arith.mulf %48, %54 : vector<8x32xf32>
    %58 = arith.addf %56, %57 : vector<8x32xf32>
    %59 = math.tanh %58 : vector<8x32xf32>
    %60 = arith.mulf %55, %59 : vector<8x32xf32>
    %c2_i32 = arith.constant 2 : i32
    %c8_i32_26 = arith.constant 8 : i32
    %61 = arith.muli %c2_i32, %c8_i32_26 : i32
    %62 = tpu.assume_multiple %61, 8 : i32
    %63 = arith.index_cast %62 : i32 to index
    %c0_27 = arith.constant 0 : index
    %64 = vector.load %arg8[%63, %c0_27] : memref<32x128xf32, #tpu.memory_space<vmem>>, vector<8x128xf32>
    %cst_28 = arith.constant dense<0.000000e+00> : vector<8x128xf32>
    %65 = tpu.matmul %60, %10, %cst_28 {dimension_numbers = #tpu.dot_dimension_numbers<[1], [0], [0], [1], [0, 0, 1, 1], [], []>} : vector<8x32xf32>, vector<32x128xf32>, vector<8x128xf32> -> vector<8x128xf32>
    %66 = arith.addf %64, %65 : vector<8x128xf32>
    %67 = arith.negf %66 : vector<8x128xf32>
    %68 = math.exp %67 : vector<8x128xf32>
    %cst_29 = arith.constant 1.000000e+00 : f32
    %69 = vector.broadcast %cst_29 : f32 to vector<8x128xf32>
    %70 = arith.addf %69, %68 : vector<8x128xf32>
    %71 = arith.divf %69, %70 : vector<8x128xf32>
    %72 = vector.extract_strided_slice %71 {offsets = [0, 0], sizes = [8, 32], strides = [1, 1]} : vector<8x128xf32> to vector<8x32xf32>
    %73 = vector.extract_strided_slice %71 {offsets = [0, 32], sizes = [8, 32], strides = [1, 1]} : vector<8x128xf32> to vector<8x32xf32>
    %74 = vector.extract_strided_slice %71 {offsets = [0, 64], sizes = [8, 32], strides = [1, 1]} : vector<8x128xf32> to vector<8x32xf32>
    %cst_30 = arith.constant 2.000000e+00 : f32
    %75 = vector.broadcast %cst_30 : f32 to vector<8x32xf32>
    %76 = arith.mulf %75, %74 : vector<8x32xf32>
    %cst_31 = arith.constant 1.000000e+00 : f32
    %77 = vector.broadcast %cst_31 : f32 to vector<8x32xf32>
    %78 = arith.subf %76, %77 : vector<8x32xf32>
    %79 = vector.extract_strided_slice %71 {offsets = [0, 96], sizes = [8, 32], strides = [1, 1]} : vector<8x128xf32> to vector<8x32xf32>
    %80 = arith.mulf %73, %58 : vector<8x32xf32>
    %81 = arith.mulf %72, %78 : vector<8x32xf32>
    %82 = arith.addf %80, %81 : vector<8x32xf32>
    %83 = math.tanh %82 : vector<8x32xf32>
    %84 = arith.mulf %79, %83 : vector<8x32xf32>
    %c3_i32 = arith.constant 3 : i32
    %c8_i32_32 = arith.constant 8 : i32
    %85 = arith.muli %c3_i32, %c8_i32_32 : i32
    %86 = tpu.assume_multiple %85, 8 : i32
    %87 = arith.index_cast %86 : i32 to index
    %c0_33 = arith.constant 0 : index
    %88 = vector.load %arg8[%87, %c0_33] : memref<32x128xf32, #tpu.memory_space<vmem>>, vector<8x128xf32>
    %cst_34 = arith.constant dense<0.000000e+00> : vector<8x128xf32>
    %89 = tpu.matmul %84, %10, %cst_34 {dimension_numbers = #tpu.dot_dimension_numbers<[1], [0], [0], [1], [0, 0, 1, 1], [], []>} : vector<8x32xf32>, vector<32x128xf32>, vector<8x128xf32> -> vector<8x128xf32>
    %90 = arith.addf %88, %89 : vector<8x128xf32>
    %91 = arith.negf %90 : vector<8x128xf32>
    %92 = math.exp %91 : vector<8x128xf32>
    %cst_35 = arith.constant 1.000000e+00 : f32
    %93 = vector.broadcast %cst_35 : f32 to vector<8x128xf32>
    %94 = arith.addf %93, %92 : vector<8x128xf32>
    %95 = arith.divf %93, %94 : vector<8x128xf32>
    %96 = vector.extract_strided_slice %95 {offsets = [0, 0], sizes = [8, 32], strides = [1, 1]} : vector<8x128xf32> to vector<8x32xf32>
    %97 = vector.extract_strided_slice %95 {offsets = [0, 32], sizes = [8, 32], strides = [1, 1]} : vector<8x128xf32> to vector<8x32xf32>
    %98 = vector.extract_strided_slice %95 {offsets = [0, 64], sizes = [8, 32], strides = [1, 1]} : vector<8x128xf32> to vector<8x32xf32>
    %cst_36 = arith.constant 2.000000e+00 : f32
    %99 = vector.broadcast %cst_36 : f32 to vector<8x32xf32>
    %100 = arith.mulf %99, %98 : vector<8x32xf32>
    %cst_37 = arith.constant 1.000000e+00 : f32
    %101 = vector.broadcast %cst_37 : f32 to vector<8x32xf32>
    %102 = arith.subf %100, %101 : vector<8x32xf32>
    %103 = vector.extract_strided_slice %95 {offsets = [0, 96], sizes = [8, 32], strides = [1, 1]} : vector<8x128xf32> to vector<8x32xf32>
    %104 = arith.mulf %97, %82 : vector<8x32xf32>
    %105 = arith.mulf %96, %102 : vector<8x32xf32>
    %106 = arith.addf %104, %105 : vector<8x32xf32>
    %107 = math.tanh %106 : vector<8x32xf32>
    %108 = arith.mulf %103, %107 : vector<8x32xf32>
    %c4_i32 = arith.constant 4 : i32
    %c0_38 = arith.constant 0 : index
    %c0_39 = arith.constant 0 : index
    %109 = vector.load %arg9[%c0_38, %c0_39] : memref<8x32xf32, #tpu.memory_space<vmem>>, vector<8x32xf32>
    tpu.vector_store %arg9[%c0_38, %c0_39], %108 {strides = array<i32>} : memref<8x32xf32, #tpu.memory_space<vmem>>, vector<8x32xf32>,
    %c0_40 = arith.constant 0 : index
    %c0_41 = arith.constant 0 : index
    %110 = vector.load %arg10[%c0_40, %c0_41] : memref<8x32xf32, #tpu.memory_space<vmem>>, vector<8x32xf32>
    tpu.vector_store %arg10[%c0_40, %c0_41], %106 {strides = array<i32>} : memref<8x32xf32, #tpu.memory_space<vmem>>, vector<8x32xf32>,
    %c1_i32_42 = arith.constant 1 : i32
    %111 = arith.cmpi eq, %arg0, %c1_i32_42 : i32
    %112 = arith.extui %111 : i1 to i32
    %c0_i32_43 = arith.constant 0 : i32
    %113 = arith.cmpi ne, %112, %c0_i32_43 : i32
    scf.if %113 {
      %c0_44 = arith.constant 0 : index
      %c0_45 = arith.constant 0 : index
      %114 = vector.load %arg5[%c0_44, %c0_45] : memref<32x128xf32, #tpu.memory_space<vmem>>, vector<32x128xf32>
      %cst_46 = arith.constant dense<0.000000e+00> : vector<8x128xf32>
      %115 = tpu.matmul %108, %114, %cst_46 {dimension_numbers = #tpu.dot_dimension_numbers<[1], [0], [0], [1], [0, 0, 1, 1], [], []>} : vector<8x32xf32>, vector<32x128xf32>, vector<8x128xf32> -> vector<8x128xf32>
      %c0_47 = arith.constant 0 : index
      %c0_48 = arith.constant 0 : index
      %116 = vector.load %arg6[%c0_47, %c0_48] : memref<1x128xf32, #tpu.memory_space<vmem>>, vector<1x128xf32>
      %117 = vector.broadcast %116 : vector<1x128xf32> to vector<8x128xf32>
      %118 = arith.addf %115, %117 : vector<8x128xf32>
      %c0_49 = arith.constant 0 : index
      %c0_50 = arith.constant 0 : index
      %119 = vector.load %arg7[%c0_49, %c0_50] : memref<8x128xf32, #tpu.memory_space<vmem>>, vector<8x128xf32>
      tpu.vector_store %arg7[%c0_49, %c0_50], %118 {strides = array<i32>} : memref<8x128xf32, #tpu.memory_space<vmem>>, vector<8x128xf32>,
    } else {
    }
    return
  }
  func.func @transform_0(%arg0: i32) -> (i32, i32) {
    %c0_i32 = arith.constant 0 : i32
    %c0_i32_0 = arith.constant 0 : i32
    return %arg0, %c0_i32 : i32, i32
  }
  func.func @transform_1(%arg0: i32) -> (i32, i32) {
    %c0_i32 = arith.constant 0 : i32
    %c0_i32_0 = arith.constant 0 : i32
    %c0_i32_1 = arith.constant 0 : i32
    return %c0_i32, %c0_i32_0 : i32, i32
  }
  func.func @transform_2(%arg0: i32) -> (i32, i32) {
    %c0_i32 = arith.constant 0 : i32
    %c0_i32_0 = arith.constant 0 : i32
    %c0_i32_1 = arith.constant 0 : i32
    return %c0_i32, %c0_i32_0 : i32, i32
  }
  func.func @transform_3(%arg0: i32) -> (i32, i32) {
    %c0_i32 = arith.constant 0 : i32
    %c0_i32_0 = arith.constant 0 : i32
    %c0_i32_1 = arith.constant 0 : i32
    return %c0_i32, %c0_i32_0 : i32, i32
  }
  func.func @transform_4(%arg0: i32) -> (i32, i32) {
    %c0_i32 = arith.constant 0 : i32
    %c0_i32_0 = arith.constant 0 : i32
    %c0_i32_1 = arith.constant 0 : i32
    return %c0_i32, %c0_i32_0 : i32, i32
  }
  func.func @transform_5(%arg0: i32) -> (i32, i32) {
    %c0_i32 = arith.constant 0 : i32
    %c0_i32_0 = arith.constant 0 : i32
    %c0_i32_1 = arith.constant 0 : i32
    return %c0_i32, %c0_i32_0 : i32, i32
  }
  func.func @transform_6(%arg0: i32) -> (i32, i32) {
    %c0_i32 = arith.constant 0 : i32
    %c0_i32_0 = arith.constant 0 : i32
    %c0_i32_1 = arith.constant 0 : i32
    return %c0_i32, %c0_i32_0 : i32, i32
  }
}

</mosaic_0001>

<bundles_post_ra>
// kernel: tpu_custom_call.1
= control target key start
LH: loop header
LB: loop body
LE: loop exit
PB: predicated region body
PF: predicated region fallthrough
CT: control target
= control target key end

     0   :  { %11 = vsyncpa [#allocation6], 0  ;;  %s824_s21 = smov 0   ;;  %s926_s0 = inlined_call_operand.vmem [shape: f32[64,16], index: 0, kind: input, shape index: {}]   ;;  %s927_s1 = inlined_call_operand.vmem [shape: f32[16,128], index: 1, kind: input, shape index: {}]   ;;  %s928_s2 = inlined_call_operand.vmem [shape: f32[32,128], index: 2, kind: input, shape index: {}]   ;;  %s929_s3 = inlined_call_operand.vmem [shape: f32[1,128], index: 3, kind: input, shape index: {}]   ;;  %s930_s4 = inlined_call_operand.vmem [shape: f32[32,128], index: 4, kind: input, shape index: {}]   ;;  %s931_s5 = inlined_call_operand.vmem [shape: f32[1,128], index: 5, kind: input, shape index: {}]   ;;  %s932_s6 = inlined_call_operand.hbm [shape: f32[8,128], index: 6, kind: output, shape index: {}]  }
   0x1 LB: > { %s830_s22 = sadd.s32 4294967295, %s782_s21   ;;  %p671_p0 = scmp.ge.s32.totalorder %s782_s21, 1  ;;  %s782_s21 = sphi %s824_s21, %s17_s21  }
   0x2   : > { %p209_p1 = scmp.lt.s32.totalorder %s782_s21, 3 }
   0x4   : > { %p210_p2 = pnand %p671_p0, %p209_p1 }
   0x5   : > { %s672_s23 = sshll.u32 (!%p210_p2), %s830_s22, 2  ;;  %p674_p4 = scmp.ne.s32.totalorder (!%p210_p2), %s830_s22, 0 }
   0x6   : > { %213 = sbr.rel (%p210_p2) target bundleno = 2594 (0xa22), region = 44  ;;  %p235_p3 = scmp.lt.s32.totalorder (!%p210_p2), %s672_s23, 7 }
   0xb   : > { %s934_s23 = smov (!%p235_p3, %s672_s23), 7  ;;  %243 = sbr.rel (%p674_p4) target bundleno = 19 (0x13), region = 48 }
   0xc   : > { %s673_s24 = sshll.u32 %s934_s23, 3 }
   0xd   : > { %s838_s27 = scalar_lea.vmem %s926_s0, %s673_s24 }
  0x10   : > { %vm244_vm0 = vcmask 261120   ;;  %v784_v0 = vmov 0.0  }
  0x11   : > { %245 = vst.msk [vmem:[#allocation3] sm:$0xff] %vm244_vm0, %v784_v0 }
  0x12   : > { %246 = vst.msk [vmem:[#allocation4] sm:$0xff] %vm244_vm0, %v784_v0 }
  0x13 PF: > { %v306_v1 = vld [vmem:[%s928_s2 + $0x18] sm:$0xff]  ;;  %v252_v2 = vld [vmem:[%s927_s1 + $0x8] sm:$0xff]  ;;  %v305_v3 = vld [vmem:[%s928_s2 + $0x10] sm:$0xff]  ;;  %vm257_vm1 = vcmask 130048   ;;  %vm310_vm2 = vcmask 261120   ;;  %s785_s18 = smov 64  }
  0x14   : > { %326 = vmatpush.msra.mxu1 %v306_v1  ;;  %284 = vmatpush.msra.mxu0 %v252_v2  ;;  %v251_v4 = vld [vmem:[%s927_s1] sm:$0xff]  ;;  %v304_v6 = vld [vmem:[%s928_s2 + $0x8] sm:$0xff]  ;;  %s786_s19 = smov 32   ;;  %v250_v37 = vld [vmem:[%s838_s27 + $0x18] sm:$0xff]  ;;  %s787_s20 = smov 96  }
  0x15   : > { %v247_v5 = vld [vmem:[%s838_s27] sm:$0xff]  ;;  %697 = vmatpush.msra.mxu2 %v252_v2  ;;  %462 = vmatpush.msra.mxu3 %v306_v1  ;;  %v248_v40 = vld [vmem:[%s838_s27 + $0x8] sm:$0xff]  ;;  %p691_p5 = scmp.ne.s32.totalorder %s830_s22, 1 }
  0x16   : > { %327 = vmatpush.msra.mxu1 %v305_v3  ;;  %285 = vmatpush.msra.mxu0 %v251_v4  ;;  %v303_v7 = vld [vmem:[%s928_s2] sm:$0xff] }
  0x17   : > { %675 = vmatmul.msk.f32.vlgmr.msra.gmra.mxu0 %vm257_vm1, %v247_v5  ;;  %698 = vmatpush.msra.mxu2 %v251_v4  ;;  %v865_v9 = vld [vmem:[%s929_s3] ss:$0 sm:$0xff] }
  0x18   : > { %328 = vmatpush.msra.mxu1 %v304_v6  ;;  %v307_v8 = vld [vmem:[#allocation3] sm:$0xff]  ;;  %463 = vmatpush.msra.mxu3 %v305_v3 }
  0x19   : > { %396 = vmatpush.msrb.mxu2 %v306_v1  ;;  %v308_v29 = vld [vmem:[#allocation4] sm:$0xff] }
  0x1a   : > { %329 = vmatpush.msra.mxu1 %v303_v7  ;;  %464 = vmatpush.msra.mxu3 %v304_v6 }
  0x1b   : > { %397 = vmatpush.msrb.mxu2 %v305_v3  ;;  %679 = vmatmul.msk.f32.vlgmr.msra.gmra.mxu1 %vm310_vm2, %v307_v8 }
  0x1c   : > { %528 = vmatpush.msrb.mxu1 %v306_v1  ;;  %465 = vmatpush.msra.mxu3 %v303_v7 }
  0x1d   : > { %398 = vmatpush.msrb.mxu2 %v304_v6 }
  0x1e   : > { %529 = vmatpush.msrb.mxu1 %v305_v3  ;;  %678 = vmatmul.msk.f32.vlgmr.msra.gmra.mxu2 %vm257_vm1, %v250_v37 }
  0x1f   : > { %399 = vmatpush.msrb.mxu2 %v303_v7  ;;  %676 = vmatmul.msk.f32.gmra.mxu0 %vm257_vm1, %v248_v40 }
  0x20   : > { %530 = vmatpush.msrb.mxu1 %v304_v6  ;;  %v249_v6 = vld [vmem:[%s838_s27 + $0x10] sm:$0xff] }
  0x22   : > { %531 = vmatpush.msrb.mxu1 %v303_v7 }
  0x27   : > { %677 = vmatmul.msk.f32.gmra.mxu0 %vm257_vm1, %v249_v6 }
  0x94   : > { %v287_v10 = vpop.f32.mrf.mxu0 }
  0x95   : > { %v288_v11 = vadd.f32 %v865_v9, %v287_v10 }
  0x98   : > { %v331_v12 = vpop.f32.mrf.mxu1 }
  0x99   : > { %v334_v13 = vadd.f32 %v331_v12, %v288_v11 }
  0x9b   : > { %v680_v14 = vmul.f32 -1.442695, %v334_v13 }
  0x9c   : > { %v290_v43 = vpop.f32.mrf.mxu0 }
  0x9d   : > { %719 = vpow2.f32 %v680_v14  ;;  %v291_v44 = vadd.f32 %v865_v9, %v290_v43 }
  0xa1   : > { %v878_v42 = vpop.f32.mrf.mxu2 }
  0xa2   : > { %v297_v37 = vadd.f32 %v865_v9, %v878_v42 }
  0xa3   : > { %v720_v15 = vpop.eup %719 }
  0xa4   : > { %v338_v16 = vadd.f32 1.0, %v720_v15  ;;  %v293_v8 = vpop.f32.mrf.mxu0 }
  0xa5   : > { %v294_v10 = vadd.f32 %v865_v9, %v293_v8 }
  0xa6   : > { %721 = vrcp.f32 %v338_v16  ;;  %v350_v20 = vand.u32 2147483648, %v338_v16  ;;  %v348_v22 = vand.u32 2147483647, %v338_v16  ;;  %vm344_vm4 = vweird.f32 %v338_v16 }
  0xa8   : > { %v351_v24 = vor.u32 1.1754944e-38, %v350_v20  ;;  %vm349_vm6 = vcmp.eq.f32.partialorder %v348_v22, 8.507059e+37 }
  0xac   : > { %v722_v17 = vpop.eup %721 }
  0xad   : > { %v340_v18 = vmul.f32 %v722_v17, %v338_v16  ;;  %vm345_vm3 = vweird.f32 %v722_v17 }
  0xae   : > { %vm346_vm5 = vmor %vm344_vm4, %vm345_vm3 }
  0xaf   : > { %v341_v19 = vsub.f32 1.0, %v340_v18 }
  0xb1   : > { %v342_v21 = vmul.f32 %v722_v17, %v341_v19 }
  0xb3   : > { %v343_v23 = vadd.f32 %v722_v17, %v342_v21 }
  0xb5   : > { %v347_v25 = vsel %vm346_vm5, %v722_v17, %v343_v23 }
  0xb6   : > { %v352_v26 = vsel %vm349_vm6, %v351_v24, %v347_v25 }
  0xb7   : > { %v354_v27 = vmul.f32 2.0, %v352_v26 }
  0xb9   : > { %v681_v28 = vadd.f32 -1.0, %v354_v27 }
  0xbb   : > { %362 = vrot.lane.b32.xlu0 %v681_v28, %s785_s18 }
  0xc3   : > { %357 = vrot.lane.b32.xlu0 %v308_v29, %s786_s19 }
 0x12d   : > { %v363_v30 = vpop.permute.xlu0 %362 }
 0x12e   : > { %v365_v31 = vmul.f32 %v363_v30, %v352_v26 }
 0x130   : > { %367 = vrot.lane.b32.xlu1 %v365_v31, %s786_s19 }
 0x135   : > { %v358_v32 = vpop.permute.xlu0 %357 }
 0x136   : > { %v360_v33 = vmul.f32 %v358_v32, %v352_v26 }
 0x1a2   : > { %v368_v34 = vpop.permute.xlu1 %367 }
 0x1a3   : > { %v370_v35 = vadd.f32 %v368_v34, %v360_v33 }
 0x1a5   : > { %723 = vtanh.f32 %v370_v35 }
 0x1ab   : > { %v724_v36 = vpop.eup %723 }
 0x1ac   : > { %373 = vrot.lane.b32.xlu1 %v724_v36, %s785_s18 }
 0x21e   : > { %v374_v38 = vpop.permute.xlu1 %373 }
 0x21f   : > { %v376_v39 = vmul.f32 %v374_v38, %v352_v26 }
 0x221   : > { %380 = vrot.lane.b32.xlu2 %v376_v39, %s786_s19 }
 0x27b   : > { %v381_v41 = vpop.permute.xlu2 %380 }
 0x27c   : > { %682 = vmatmul.msk.f32.vlgmr.msrb.gmra.mxu2 %vm310_vm2, %v381_v41 }
 0x2ff   : > { %v401_v45 = vpop.f32.mrf.mxu2 }
 0x300   : > { %v404_v46 = vadd.f32 %v401_v45, %v291_v44 }
 0x302   : > { %v683_v47 = vmul.f32 -1.442695, %v404_v46 }
 0x304   : > { %725 = vpow2.f32 %v683_v47 }
 0x30a   : > { %v726_v48 = vpop.eup %725 }
 0x30b   : > { %v408_v49 = vadd.f32 1.0, %v726_v48 }
 0x30d   : > { %727 = vrcp.f32 %v408_v49  ;;  %v420_v53 = vand.u32 2147483648, %v408_v49  ;;  %v418_v55 = vand.u32 2147483647, %v408_v49  ;;  %vm414_vm8 = vweird.f32 %v408_v49 }
 0x30f   : > { %v421_v57 = vor.u32 1.1754944e-38, %v420_v53  ;;  %vm419_vm10 = vcmp.eq.f32.partialorder %v418_v55, 8.507059e+37 }
 0x313   : > { %v728_v50 = vpop.eup %727 }
 0x314   : > { %v410_v51 = vmul.f32 %v728_v50, %v408_v49  ;;  %vm415_vm7 = vweird.f32 %v728_v50 }
 0x315   : > { %vm416_vm9 = vmor %vm414_vm8, %vm415_vm7 }
 0x316   : > { %v411_v52 = vsub.f32 1.0, %v410_v51 }
 0x318   : > { %v412_v54 = vmul.f32 %v728_v50, %v411_v52 }
 0x31a   : > { %v413_v56 = vadd.f32 %v728_v50, %v412_v54 }
 0x31c   : > { %v417_v58 = vsel %vm416_vm9, %v728_v50, %v413_v56 }
 0x31d   : > { %v422_v59 = vsel %vm419_vm10, %v421_v57, %v417_v58 }
 0x31e   : > { %v424_v60 = vmul.f32 2.0, %v422_v59  ;;  %v426_v0 = vmul.f32 %v422_v59, %v370_v35 }
 0x320   : > { %v684_v61 = vadd.f32 -1.0, %v424_v60 }
 0x322   : > { %428 = vrot.lane.b32.xlu2 %v684_v61, %s785_s18 }
 0x37c   : > { %v429_v62 = vpop.permute.xlu2 %428 }
 0x37d   : > { %v431_v63 = vmul.f32 %v429_v62, %v422_v59 }
 0x37f   : > { %433 = vrot.lane.b32.xlu0 %v431_v63, %s786_s19 }
 0x3f1   : > { %v434_v1 = vpop.permute.xlu0 %433 }
 0x3f2   : > { %v436_v2 = vadd.f32 %v434_v1, %v426_v0 }
 0x3f4   : > { %729 = vtanh.f32 %v436_v2 }
 0x3fa   : > { %v730_v3 = vpop.eup %729 }
 0x3fb   : > { %439 = vrot.lane.b32.xlu1 %v730_v3, %s785_s18 }
 0x46d   : > { %v440_v4 = vpop.permute.xlu1 %439 }
 0x46e   : > { %v442_v5 = vmul.f32 %v440_v4, %v422_v59 }
 0x470   : > { %446 = vrot.lane.b32.xlu2 %v442_v5, %s786_s19 }
 0x4ca   : > { %v447_v7 = vpop.permute.xlu2 %446 }
 0x4cb   : > { %685 = vmatmul.msk.f32.vlgmr.msra.gmra.mxu3 %vm310_vm2, %v447_v7 }
 0x54e   : > { %v467_v11 = vpop.f32.mrf.mxu3 }
 0x54f   : > { %v470_v12 = vadd.f32 %v467_v11, %v294_v10 }
 0x551   : > { %v686_v13 = vmul.f32 -1.442695, %v470_v12 }
 0x553   : > { %731 = vpow2.f32 %v686_v13 }
 0x559   : > { %v732_v14 = vpop.eup %731 }
 0x55a   : > { %v474_v15 = vadd.f32 1.0, %v732_v14 }
 0x55c   : > { %733 = vrcp.f32 %v474_v15  ;;  %v486_v19 = vand.u32 2147483648, %v474_v15  ;;  %v484_v21 = vand.u32 2147483647, %v474_v15  ;;  %vm480_vm12 = vweird.f32 %v474_v15 }
 0x55e   : > { %v487_v23 = vor.u32 1.1754944e-38, %v486_v19  ;;  %vm485_vm14 = vcmp.eq.f32.partialorder %v484_v21, 8.507059e+37 }
 0x562   : > { %v734_v16 = vpop.eup %733 }
 0x563   : > { %v476_v17 = vmul.f32 %v734_v16, %v474_v15  ;;  %vm481_vm11 = vweird.f32 %v734_v16 }
 0x564   : > { %vm482_vm13 = vmor %vm480_vm12, %vm481_vm11 }
 0x565   : > { %v477_v18 = vsub.f32 1.0, %v476_v17 }
 0x567   : > { %v478_v20 = vmul.f32 %v734_v16, %v477_v18 }
 0x569   : > { %v479_v22 = vadd.f32 %v734_v16, %v478_v20 }
 0x56b   : > { %v483_v24 = vsel %vm482_vm13, %v734_v16, %v479_v22 }
 0x56c   : > { %v488_v25 = vsel %vm485_vm14, %v487_v23, %v483_v24 }
 0x56d   : > { %v490_v26 = vmul.f32 2.0, %v488_v25  ;;  %v492_v30 = vmul.f32 %v488_v25, %v436_v2 }
 0x56f   : > { %v687_v27 = vadd.f32 -1.0, %v490_v26 }
 0x571   : > { %494 = vrot.lane.b32.xlu0 %v687_v27, %s785_s18 }
 0x5e3   : > { %v495_v28 = vpop.permute.xlu0 %494 }
 0x5e4   : > { %v497_v29 = vmul.f32 %v495_v28, %v488_v25 }
 0x5e6   : > { %499 = vrot.lane.b32.xlu1 %v497_v29, %s786_s19 }
 0x658   : > { %v500_v31 = vpop.permute.xlu1 %499 }
 0x659   : > { %v502_v32 = vadd.f32 %v500_v31, %v492_v30 }
 0x65b   : > { %735 = vtanh.f32 %v502_v32 }
 0x661   : > { %v736_v33 = vpop.eup %735 }
 0x662   : > { %505 = vrot.lane.b32.xlu2 %v736_v33, %s785_s18 }
 0x6bc   : > { %v506_v34 = vpop.permute.xlu2 %505 }
 0x6bd   : > { %v508_v35 = vmul.f32 %v506_v34, %v488_v25 }
 0x6bf   : > { %512 = vrot.lane.b32.xlu0 %v508_v35, %s786_s19 }
 0x731   : > { %v513_v36 = vpop.permute.xlu0 %512 }
 0x732   : > { %688 = vmatmul.msk.f32.vlgmr.msrb.gmra.mxu1 %vm310_vm2, %v513_v36 }
 0x7af   : > { %v533_v38 = vpop.f32.mrf.mxu1 }
 0x7b0   : > { %v536_v39 = vadd.f32 %v533_v38, %v297_v37 }
 0x7b2   : > { %v689_v40 = vmul.f32 -1.442695, %v536_v39 }
 0x7b4   : > { %737 = vpow2.f32 %v689_v40 }
 0x7ba   : > { %v738_v41 = vpop.eup %737 }
 0x7bb   : > { %v540_v43 = vadd.f32 1.0, %v738_v41 }
 0x7bd   : > { %739 = vrcp.f32 %v540_v43  ;;  %v552_v47 = vand.u32 2147483648, %v540_v43  ;;  %v550_v49 = vand.u32 2147483647, %v540_v43  ;;  %vm546_vm0 = vweird.f32 %v540_v43 }
 0x7bf   : > { %v553_v51 = vor.u32 1.1754944e-38, %v552_v47  ;;  %vm551_vm3 = vcmp.eq.f32.partialorder %v550_v49, 8.507059e+37 }
 0x7c3   : > { %v740_v44 = vpop.eup %739 }
 0x7c4   : > { %v542_v45 = vmul.f32 %v740_v44, %v540_v43  ;;  %vm547_vm15 = vweird.f32 %v740_v44 }
 0x7c5   : > { %vm548_vm1 = vmor %vm546_vm0, %vm547_vm15 }
 0x7c6   : > { %v543_v46 = vsub.f32 1.0, %v542_v45 }
 0x7c8   : > { %v544_v48 = vmul.f32 %v740_v44, %v543_v46 }
 0x7ca   : > { %v545_v50 = vadd.f32 %v740_v44, %v544_v48 }
 0x7cc   : > { %v549_v52 = vsel %vm548_vm1, %v740_v44, %v545_v50 }
 0x7cd   : > { %v554_v9 = vsel %vm551_vm3, %v553_v51, %v549_v52 }
 0x7ce   : > { %v556_v42 = vmul.f32 2.0, %v554_v9  ;;  %v558_v56 = vmul.f32 %v554_v9, %v502_v32 }
 0x7d0   : > { %v690_v53 = vadd.f32 -1.0, %v556_v42 }
 0x7d2   : > { %560 = vrot.lane.b32.xlu1 %v690_v53, %s785_s18 }
 0x844   : > { %v561_v54 = vpop.permute.xlu1 %560 }
 0x845   : > { %v563_v55 = vmul.f32 %v561_v54, %v554_v9 }
 0x847   : > { %565 = vrot.lane.b32.xlu2 %v563_v55, %s786_s19 }
 0x8a1   : > { %v566_v57 = vpop.permute.xlu2 %565 }
 0x8a2   : > { %v568_v58 = vadd.f32 %v566_v57, %v558_v56 }
 0x8a4   : > { %741 = vtanh.f32 %v568_v58  ;;  %581 = vrot.lane.b32.xlu2 %v568_v58, %s787_s20 }
 0x8aa   : > { %v742_v59 = vpop.eup %741 }
 0x8ab   : > { %571 = vrot.lane.b32.xlu0 %v742_v59, %s785_s18 }
 0x8fe   : > { %v582_v60 = vpop.permute.xlu2 %581 }
 0x8ff   : > { %584 = vst.msk [vmem:[#allocation4] sm:$0xff] %vm310_vm2, %v582_v60 }
 0x91d   : > { %v572_v61 = vpop.permute.xlu0 %571 }
 0x91e   : > { %v574_v62 = vmul.f32 %v572_v61, %v554_v9 }
 0x920   : > { %576 = vrot.lane.b32.xlu1 %v574_v62, %s786_s19 }
 0x98f   : > { %588 = sbr.rel (%p691_p5) target bundleno = 2589 (0xa1d), region = 52 }
 0x992   : > { %v577_v63 = vpop.permute.xlu1 %576 }
 0x993   : > { %579 = vst.msk [vmem:[#allocation3] sm:$0xff] %vm310_vm2, %v577_v63 }
 0x994   : > { %v592_v0 = vld [vmem:[%s930_s4 + $0x18] sm:$0xff]  ;;  %v591_v1 = vld [vmem:[%s930_s4 + $0x10] sm:$0xff]  ;;  %v590_v2 = vld [vmem:[%s930_s4 + $0x8] sm:$0xff] }
 0x995   : > { %611 = vmatpush.msra.mxu0 %v592_v0  ;;  %v589_v3 = vld [vmem:[%s930_s4] sm:$0xff] }
 0x996   : > { %v743_v4 = vld [vmem:[%s931_s5] ss:$0 sm:$0xff] }
 0x997   : > { %612 = vmatpush.msra.mxu0 %v591_v1 }
 0x999   : > { %613 = vmatpush.msra.mxu0 %v590_v2 }
 0x99b   : > { %614 = vmatpush.msra.mxu0 %v589_v3 }
 0x99c   : > { %692 = vmatmul.msk.f32.vlgmr.msra.gmra.mxu0 %vm310_vm2, %v577_v63 }
 0xa19   : > { %v616_v5 = vpop.f32.mrf.mxu0 }
 0xa1a   : > { %v617_v6 = vadd.f32 %v743_v4, %v616_v5 }
 0xa1c   : > { %619 = vst [vmem:[#allocation5] sm:$0xff] %v617_v6 }
 0xa1d PF: > { %p703_p6 = scmp.eq.s32.totalorder %s830_s22, 1  ;;  %s788_s9 = smov [#allocation5]  }
 0xa1e   : > { %s626_s10 = sshll.u32 %s788_s9, 4  ;;  %s628_s13 = sshll.u32 %s932_s6, 4  ;;  %s627_s10 = int_to_ptr.vmem [resolvable:$true] %s626_s10  ;;  %s629_s13 = int_to_ptr.hbm [resolvable:$true] %s628_s13 }
 0xa1f   : > { %700 = dma.vmem_to_hbm [thread:$0]  (%p703_p6), %s627_s10, 128, %s629_s13, [#allocation6]  }
 0xa20   : > { %777 = dma.done.wait (%p703_p6), [#allocation6], 128  }
 0xa21   : > { %779 = vsyncadd (%p703_p6), [#allocation6], 4294967168 }
 0xa22 PF: > { %s17_s21 = sadd.s32 1, %s782_s21  }
 0xa23   : > { %p14_p7 = scmp.ge.s32.totalorder %s17_s21, 4  }
 0xa25   :  { %16 = sbr.rel (!%p14_p7) target bundleno = 1 (0x1), region = 82 }
 0xa2a   :  { %642 = vsyncpa [#allocation6], 1 }
 0xa2b   :  { %644 = vsyncpa [#allocation6 + $0x1], 1 }

</bundles_post_ra>
